<compile_context>
chip_gen: v7x
topology: tpu7x:2x2x1
jax: 0.10.0
libtpu: 0.0.40
codegen_flags: <defaults>
</compile_context>

<pallas_src>
import jax
import jax.numpy as jnp
from jax.experimental import pallas as pl
from jax.experimental.pallas import tpu as pltpu


# ----------------------------------------------------------------------------
# Kernels
# ----------------------------------------------------------------------------
def _dot_vt(hv, ht):
    # (tm, tk) x (tn, tk) contracting the shared feature axis -> (tm, tn).
    return jax.lax.dot_general(
        hv, ht,
        dimension_numbers=(((1,), (1,)), ((), ())),
        preferred_element_type=jnp.float32)


def _devise_kernel_single_k(cnt_ref, hv_ref, ht_ref, mask_ref, out_ref):
    # cnt_ref:  (gi*gj,) int32 per-tile edge counts (SMEM, scalar prefetch)
    # hv_ref:   (tm, tk) bf16 video-feature tile (tk == full padded D)
    # ht_ref:   (tn, tk) bf16 tag-feature tile
    # mask_ref: (tm, tn) int16 edge-multiplicity tile (pos + neg edges)
    # out_ref:  (tm, tn) f32 masked score tile
    i = pl.program_id(0)
    j = pl.program_id(1)
    nj = pl.num_programs(1)
    has_edges = cnt_ref[i * nj + j] > 0

    @pl.when(has_edges)
    def _():
        out_ref[...] = _dot_vt(hv_ref[...], ht_ref[...]) * mask_ref[...].astype(
            jnp.float32)

    @pl.when(jnp.logical_not(has_edges))
    def _():
        out_ref[...] = jnp.zeros_like(out_ref)


def _devise_kernel_k_tiled(cnt_ref, hv_ref, ht_ref, mask_ref, out_ref):
    # Fallback for very large D: accumulate directly into the k-invariant
    # (hence VMEM-resident) out_ref; mask applied in place on the last K step.
    i = pl.program_id(0)
    j = pl.program_id(1)
    k = pl.program_id(2)
    nj = pl.num_programs(1)
    nk = pl.num_programs(2)
    has_edges = cnt_ref[i * nj + j] > 0
    no_edges = jnp.logical_not(has_edges)

    @pl.when(jnp.logical_and(no_edges, k == 0))
    def _():
        out_ref[...] = jnp.zeros_like(out_ref)

    @pl.when(jnp.logical_and(has_edges, k == 0))
    def _():
        out_ref[...] = _dot_vt(hv_ref[...], ht_ref[...])

    @pl.when(jnp.logical_and(has_edges, k > 0))
    def _():
        out_ref[...] += _dot_vt(hv_ref[...], ht_ref[...])

    @pl.when(jnp.logical_and(has_edges, k == nk - 1))
    def _():
        out_ref[...] = out_ref[...] * mask_ref[...].astype(jnp.float32)


# ----------------------------------------------------------------------------
# Wrapper
# ----------------------------------------------------------------------------
def _round_up(n, m):
    return ((n + m - 1) // m) * m


def _pad_and_tile(n, tile, align):
    """Returns (padded_size, tile_size) with padded_size % tile_size == 0."""
    n_aligned = _round_up(max(n, 1), align)
    if n_aligned <= tile:
        return n_aligned, n_aligned        # one block covering the padded dim
    return _round_up(n, tile), tile


def devise_linker_forward(h_video, h_tag, pos_src, pos_dst, neg_src, neg_dst,
                          *, tile_v=512, tile_t=512, max_tile_k=2048,
                          feature_dtype=jnp.bfloat16):
    """Pallas-backed DeviseLinker.forward (eval mode).

    Args:
      h_video: (V, D) float32 video node features.
      h_tag:   (T, D) float32 tag node features.
      pos_src/pos_dst: (E_pos,) int32 tag / video indices of positive edges.
      neg_src/neg_dst: (E_neg,) int32 tag / video indices of negative edges.

    Returns:
      cls_score: (V, T) float32
      labels:    (V, T) float32
    """
    V, D = h_video.shape
    T, _ = h_tag.shape

    # --- glue (plain JAX): edge multiplicities, labels -----------------------
    # Multiplicity accumulation in int32 (no int8 wrap), shipped as int16.
    # cls_score[v, t] = multiplicity(t->v among pos+neg) * <h_tag[t], h_video[v]>
    # which matches torch.sparse_coo_tensor coalescing (duplicate indices sum).
    all_src = jnp.concatenate([pos_src, neg_src]).astype(jnp.int32)
    all_dst = jnp.concatenate([pos_dst, neg_dst]).astype(jnp.int32)
    edge_mult = jnp.zeros((V, T), jnp.int32).at[all_dst, all_src].add(1)
    edge_mask = edge_mult.astype(jnp.int16)

    labels = jnp.zeros((V, T), jnp.float32)
    labels = labels.at[pos_dst, pos_src].add(1.0)   # pos edges unique -> 0/1

    # --- padding / tile selection --------------------------------------------
    # V tiles: multiples of 32 (8/16-bit sublane packing); T/D: 128 lanes.
    Vp, tm = _pad_and_tile(V, tile_v, 32)
    Tp, tn = _pad_and_tile(T, tile_t, 128)
    Dp, tk = _pad_and_tile(D, max_tile_k, 128)

    hv_p = h_video.astype(feature_dtype)
    ht_p = h_tag.astype(feature_dtype)
    if Vp != V or Dp != D:
        hv_p = jnp.pad(hv_p, ((0, Vp - V), (0, Dp - D)))
    if Tp != T or Dp != D:
        ht_p = jnp.pad(ht_p, ((0, Tp - T), (0, Dp - D)))
    mask_p = edge_mask
    if Vp != V or Tp != T:
        mask_p = jnp.pad(mask_p, ((0, Vp - V), (0, Tp - T)))

    gi, gj, gk = Vp // tm, Tp // tn, Dp // tk

    # --- per-tile edge counts (scalar prefetch -> SMEM, enables tile skip) ---
    tile_counts = jnp.zeros((gi * gj,), jnp.int32)
    tile_counts = tile_counts.at[(all_dst // tm) * gj + (all_src // tn)].add(1)

    # --- VMEM budget (double-buffered inputs/outputs) -------------------------
    fbytes = jnp.dtype(feature_dtype).itemsize
    footprint = 2 * (tm * tk * fbytes + tn * tk * fbytes
                     + tm * tn * 2 + tm * tn * 4)
    vmem_limit = min(max(int(footprint * 1.25) + (2 << 20), 16 << 20), 40 << 20)

    if gk == 1:
        kernel = _devise_kernel_single_k
        grid = (gi, gj)
        in_specs = [
            pl.BlockSpec((tm, tk), lambda i, j, cnt: (i, 0)),   # h_video
            pl.BlockSpec((tn, tk), lambda i, j, cnt: (j, 0)),   # h_tag
            pl.BlockSpec((tm, tn), lambda i, j, cnt: (i, j)),   # mask (int16)
        ]
        out_specs = pl.BlockSpec((tm, tn), lambda i, j, cnt: (i, j))
        dims = ("parallel", "parallel")
    else:
        kernel = _devise_kernel_k_tiled
        grid = (gi, gj, gk)
        in_specs = [
            pl.BlockSpec((tm, tk), lambda i, j, k, cnt: (i, k)),
            pl.BlockSpec((tn, tk), lambda i, j, k, cnt: (j, k)),
            pl.BlockSpec((tm, tn), lambda i, j, k, cnt: (i, j)),
        ]
        out_specs = pl.BlockSpec((tm, tn), lambda i, j, k, cnt: (i, j))
        dims = ("parallel", "parallel", "arbitrary")

    cls_p = pl.pallas_call(
        kernel,
        out_shape=jax.ShapeDtypeStruct((Vp, Tp), jnp.float32),
        grid_spec=pltpu.PrefetchScalarGridSpec(
            num_scalar_prefetch=1,
            grid=grid,
            in_specs=in_specs,
            out_specs=out_specs,
        ),
        compiler_params=pltpu.CompilerParams(
            dimension_semantics=dims,
            vmem_limit_bytes=vmem_limit),
    )(tile_counts, hv_p, ht_p, mask_p)

    cls_score = cls_p[:V, :T]
    return cls_score, labels


# ----------------------------------------------------------------------------
# Pure-JAX reference mirroring the torch edge-gather/scatter semantics.
# ----------------------------------------------------------------------------
def _reference_forward(h_video, h_tag, pos_src, pos_dst, neg_src, neg_dst):
    V, _ = h_video.shape
    T, _ = h_tag.shape
    pos_score = jnp.sum(h_tag[pos_src] * h_video[pos_dst], axis=-1)
    neg_score = jnp.sum(h_tag[neg_src] * h_video[neg_dst], axis=-1)
    src = jnp.concatenate([pos_src, neg_src])
    dst = jnp.concatenate([pos_dst, neg_dst])
    score = jnp.concatenate([pos_score, neg_score])
    cls_score = jnp.zeros((V, T), jnp.float32).at[dst, src].add(score)
    labels = jnp.zeros((V, T), jnp.float32).at[pos_dst, pos_src].add(1.0)
    return cls_score, labels


if __name__ == "__main__":
    key = jax.random.PRNGKey(0)
    k_hv, k_ht, k_pv, k_nt, k_nv = jax.random.split(key, 5)

    V, T, D = 8, 16, 32          # videos, tags, hidden dim
    E_pos, E_neg = 8, 8

    h_video = jax.random.normal(k_hv, (V, D), jnp.float32)
    h_tag = jax.random.normal(k_ht, (T, D), jnp.float32)

    # Deterministic synthetic graph: unique positive edges, random negatives
    # (negatives may collide with positives -> exercises multiplicity summing).
    pos_src = jnp.arange(E_pos, dtype=jnp.int32)                         # tags
    pos_dst = jax.random.permutation(k_pv, V)[:E_pos].astype(jnp.int32)  # video
    neg_src = jax.random.randint(k_nt, (E_neg,), 0, T, jnp.int32)
    neg_dst = jax.random.randint(k_nv, (E_neg,), 0, V, jnp.int32)

    cls_score, labels = devise_linker_forward(
        h_video, h_tag, pos_src, pos_dst, neg_src, neg_dst)
    jax.block_until_ready(cls_score)
    jax.block_until_ready(labels)

    # Reference #1: same bf16-rounded inputs, f32 accumulation (tight check).
    hv_bf = h_video.astype(jnp.bfloat16).astype(jnp.float32)
    ht_bf = h_tag.astype(jnp.bfloat16).astype(jnp.float32)
    ref_bf, _ = _reference_forward(hv_bf, ht_bf, pos_src, pos_dst,
                                   neg_src, neg_dst)
    # Reference #2: full-f32 torch semantics (loose check, bf16 input rounding).
    ref_f32, ref_labels = _reference_forward(
        h_video, h_tag, pos_src, pos_dst, neg_src, neg_dst)

    assert cls_score.shape == (V, T) and labels.shape == (V, T)
    assert jnp.allclose(cls_score, ref_bf, atol=1e-4, rtol=1e-4), \
        "cls_score mismatch vs bf16-rounded reference"
    assert jnp.allclose(cls_score, ref_f32, atol=0.3, rtol=0.05), \
        "cls_score mismatch vs f32 reference"
    assert jnp.allclose(labels, ref_labels), "labels mismatch"

    print("KERNEL_OK")
</pallas_src>

<mosaic_0001>
module attributes {stable_mosaic.version = 11 : i64} {
  func.func @_devise_kernel_single_k(%arg0: i32, %arg1: i32, %arg2: memref<1xi32, #tpu.memory_space<smem>>, %arg3: memref<32x128xbf16, #tpu.memory_space<vmem>>, %arg4: memref<128x128xbf16, #tpu.memory_space<vmem>>, %arg5: memref<32x128xi16, #tpu.memory_space<vmem>>, %arg6: memref<32x128xf32, #tpu.memory_space<vmem>>) attributes {dimension_semantics = [#tpu.dimension_semantics<parallel>, #tpu.dimension_semantics<parallel>], iteration_bounds = array<i64: 1, 1>, scalar_prefetch = 1 : i64, scratch_operands = 0 : i64, tpu.core_type = #tpu.core_type<tc>, window_params = [{transform_indices = @transform_0, window_bounds = array<i64: 32, 128>}, {transform_indices = @transform_1, window_bounds = array<i64: 128, 128>}, {transform_indices = @transform_2, window_bounds = array<i64: 32, 128>}, {transform_indices = @transform_3, window_bounds = array<i64: 32, 128>}]} {
    %c1_i32 = arith.constant 1 : i32
    %0 = arith.muli %arg0, %c1_i32 : i32
    %1 = arith.addi %0, %arg1 : i32
    %2 = arith.index_cast %1 : i32 to index
    %3 = memref.load %arg2[%2] : memref<1xi32, #tpu.memory_space<smem>>
    %c0_i32 = arith.constant 0 : i32
    %4 = arith.cmpi sgt, %3, %c0_i32 : i32
    %5 = arith.extui %4 : i1 to i32
    %c0_i32_0 = arith.constant 0 : i32
    %6 = arith.cmpi ne, %5, %c0_i32_0 : i32
    scf.if %6 {
      %c0 = arith.constant 0 : index
      %c0_2 = arith.constant 0 : index
      %10 = vector.load %arg3[%c0, %c0_2] : memref<32x128xbf16, #tpu.memory_space<vmem>>, vector<32x128xbf16>
      %c0_3 = arith.constant 0 : index
      %c0_4 = arith.constant 0 : index
      %11 = vector.load %arg4[%c0_3, %c0_4] : memref<128x128xbf16, #tpu.memory_space<vmem>>, vector<128x128xbf16>
      %cst = arith.constant dense<0.000000e+00> : vector<32x128xf32>
      %12 = tpu.matmul %10, %11, %cst {dimension_numbers = #tpu.dot_dimension_numbers<[1], [1], [0], [0], [0, 0, 1, 0], [], []>} : vector<32x128xbf16>, vector<128x128xbf16>, vector<32x128xf32> -> vector<32x128xf32>
      %c0_5 = arith.constant 0 : index
      %c0_6 = arith.constant 0 : index
      %13 = vector.load %arg5[%c0_5, %c0_6] : memref<32x128xi16, #tpu.memory_space<vmem>>, vector<32x128xi16>
      %14 = arith.sitofp %13 : vector<32x128xi16> to vector<32x128xf32>
      %15 = arith.mulf %12, %14 : vector<32x128xf32>
      %c0_7 = arith.constant 0 : index
      %c0_8 = arith.constant 0 : index
      %16 = vector.load %arg6[%c0_7, %c0_8] : memref<32x128xf32, #tpu.memory_space<vmem>>, vector<32x128xf32>
      tpu.vector_store %arg6[%c0_7, %c0_8], %15 {strides = array<i32>} : memref<32x128xf32, #tpu.memory_space<vmem>>, vector<32x128xf32>,
    } else {
    }
    %true = arith.constant true
    %7 = arith.xori %4, %true : i1
    %8 = arith.extui %7 : i1 to i32
    %c0_i32_1 = arith.constant 0 : i32
    %9 = arith.cmpi ne, %8, %c0_i32_1 : i32
    scf.if %9 {
      %cst = arith.constant 0.000000e+00 : f32
      %10 = vector.broadcast %cst : f32 to vector<32x128xf32>
      %c0 = arith.constant 0 : index
      %c0_2 = arith.constant 0 : index
      %11 = vector.load %arg6[%c0, %c0_2] : memref<32x128xf32, #tpu.memory_space<vmem>>, vector<32x128xf32>
      tpu.vector_store %arg6[%c0, %c0_2], %10 {strides = array<i32>} : memref<32x128xf32, #tpu.memory_space<vmem>>, vector<32x128xf32>,
    } else {
    }
    return
  }
  func.func @transform_0(%arg0: i32, %arg1: i32, %arg2: memref<1xi32, #tpu.memory_space<smem>>) -> (i32, i32) {
    %c0_i32 = arith.constant 0 : i32
    %c0_i32_0 = arith.constant 0 : i32
    return %arg0, %c0_i32 : i32, i32
  }
  func.func @transform_1(%arg0: i32, %arg1: i32, %arg2: memref<1xi32, #tpu.memory_space<smem>>) -> (i32, i32) {
    %c0_i32 = arith.constant 0 : i32
    %c0_i32_0 = arith.constant 0 : i32
    return %arg1, %c0_i32 : i32, i32
  }
  func.func @transform_2(%arg0: i32, %arg1: i32, %arg2: memref<1xi32, #tpu.memory_space<smem>>) -> (i32, i32) {
    %c0_i32 = arith.constant 0 : i32
    return %arg0, %arg1 : i32, i32
  }
  func.func @transform_3(%arg0: i32, %arg1: i32, %arg2: memref<1xi32, #tpu.memory_space<smem>>) -> (i32, i32) {
    %c0_i32 = arith.constant 0 : i32
    return %arg0, %arg1 : i32, i32
  }
}

</mosaic_0001>

<bundles_post_ra>
// kernel: tpu_custom_call.1
= control target key start
LH: loop header
LB: loop body
LE: loop exit
PB: predicated region body
PF: predicated region fallthrough
CT: control target
= control target key end

     0   :  { %10 = vsyncpa [#allocation5], 0  ;;  %s508_s0 = inlined_call_operand.<no memory space> [shape: s32[1], index: 0, kind: input, shape index: {}]   ;;  %s509_s1 = inlined_call_operand.hbm [shape: bf16[32,128], index: 1, kind: input, shape index: {}]   ;;  %s510_s2 = inlined_call_operand.hbm [shape: bf16[128,128], index: 2, kind: input, shape index: {}]   ;;  %s511_s3 = inlined_call_operand.hbm [shape: s16[32,128], index: 3, kind: input, shape index: {}]   ;;  %s512_s4 = inlined_call_operand.hbm [shape: f32[32,128], index: 4, kind: output, shape index: {}]  }
   0x1   :  { %11 = vsyncpa [#allocation8], 0 }
   0x2   :  { %12 = vsyncpa [#allocation6], 0  ;;  %s404_s15 = smov [#allocation7]   ;;  %s405_s17 = smov [#allocation4]  }
   0x3   :  { %s30_s16 = sshll.u32 %s404_s15, 4  ;;  %s18_s18 = sshll.u32 %s405_s17, 4  ;;  %s31_s16 = int_to_ptr.vmem [resolvable:$true] %s30_s16  ;;  %s438_s18 = int_to_ptr.vmem [resolvable:$true] %s18_s18 }
   0x4   :  { %s310_s21 = scalar_lea.hbm %s510_s2, 1024 }
   0x5   :  { %p311_p0 = scmp.ne.s32.totalorder %s510_s2, %s310_s21  ;;  %p314_p1 = scmp.lt.u32.totalorder %s310_s21, %s510_s2 }
   0x7   :  { %p316_p2 = pnand %p314_p1, %p311_p0 }
   0x9   :  { %319 = shalt.err (!%p316_p2)
}
   0xa   :  { %s320_s26 = scalar_lea.vmem %s31_s16, 1024  ;;  %p325_p4 = scmp.lt.s32.totalorder %s31_s16, %s31_s16 }
   0xb   :  { %p321_p3 = scmp.ne.s32.totalorder %s31_s16, %s320_s26  ;;  %p326_p5 = scmp.lt.s32.totalorder %s320_s26, %s320_s26 }
   0xd   :  { %p327_p6 = por %p326_p5, %p325_p4 }
   0xf   :  { %p328_p7 = pnand %p327_p6, %p321_p3 }
  0x11   :  { %331 = shalt.err (!%p328_p7)
}
  0x12   :  { %s406_s27 = smov 64   ;;  %s407_s28 = smov 4  }
  0x13   :  { %36 = dma.hbm_to_vmem [thread:$0]  %s510_s2, 1024, %s31_s16, [#allocation8], %s406_s27, %s406_s27, %s407_s28  }
  0x14   :  { %s332_s7 = scalar_lea.hbm %s509_s1, 256 }
  0x15   :  { %p333_p8 = scmp.ne.s32.totalorder %s509_s1, %s332_s7  ;;  %p336_p9 = scmp.lt.u32.totalorder %s332_s7, %s509_s1 }
  0x17   :  { %p338_p10 = pnand %p336_p9, %p333_p8 }
  0x19   :  { %341 = shalt.err (!%p338_p10)
}
  0x1a   :  { %s342_s12 = scalar_lea.vmem %s438_s18, 256  ;;  %p347_p12 = scmp.lt.s32.totalorder %s438_s18, %s438_s18 }
  0x1b   :  { %p343_p11 = scmp.ne.s32.totalorder %s438_s18, %s342_s12  ;;  %p348_p13 = scmp.lt.s32.totalorder %s342_s12, %s342_s12 }
  0x1d   :  { %p349_p0 = por %p348_p13, %p347_p12 }
  0x1f   :  { %p350_p1 = pnand %p349_p0, %p343_p11 }
  0x21   :  { %353 = shalt.err (!%p350_p1)
}
  0x22   :  { %24 = dma.hbm_to_vmem [thread:$0]  %s509_s1, 256, %s438_s18, [#allocation5], %s406_s27, %s406_s27, %s407_s28  }
  0x23   :  { %s408_s14 = smov [#allocation9]   ;;  %s354_s19 = scalar_lea.hbm %s511_s3, 256 }
  0x24   :  { %s42_s15 = sshll.u32 %s408_s14, 4  ;;  %p355_p2 = scmp.ne.s32.totalorder %s511_s3, %s354_s19  ;;  %s43_s15 = int_to_ptr.vmem [resolvable:$true] %s42_s15 }
  0x25   :  { %p358_p3 = scmp.lt.u32.totalorder %s354_s19, %s511_s3 }
  0x27   :  { %p360_p4 = pnand %p358_p3, %p355_p2 }
  0x29   :  { %363 = shalt.err (!%p360_p4)
}
  0x2a   :  { %s364_s24 = scalar_lea.vmem %s43_s15, 256  ;;  %p369_p6 = scmp.lt.s32.totalorder %s43_s15, %s43_s15 }
  0x2b   :  { %p365_p5 = scmp.ne.s32.totalorder %s43_s15, %s364_s24  ;;  %p370_p7 = scmp.lt.s32.totalorder %s364_s24, %s364_s24 }
  0x2d   :  { %p371_p8 = por %p370_p7, %p369_p6 }
  0x2f   :  { %p372_p9 = pnand %p371_p8, %p365_p5 }
  0x31   :  { %375 = shalt.err (!%p372_p9)
}
  0x32   :  { %48 = dma.hbm_to_vmem [thread:$0]  %s511_s3, 256, %s43_s15, [#allocation8], %s406_s27, %s406_s27, %s407_s28  }
  0x33   :  { %398 = dma.done.wait [#allocation5], 256  }
  0x34   :  { %399 = vsyncadd [#allocation5], 4294967040 }
  0x35   :  { %400 = dma.done.wait [#allocation8], 1280  }
  0x36   :  { %401 = vsyncadd [#allocation8], 4294966016  ;;  %p240_p10 = scmp.le.s32.totalorder %s508_s0, 0 }
  0x37   :  { %v300_v0 = vld [vmem:[#allocation7] sm:$0xff] (!%p240_p10)   ;;  %v301_v1 = vld [vmem:[#allocation7 + $0x8] sm:$0xff] (!%p240_p10)   ;;  %v302_v2 = vld [vmem:[#allocation7 + $0x10] sm:$0xff] (!%p240_p10)  }
  0x38   :  { %64 = sbr.rel (%p240_p10) target bundleno = 338 (0x152), region = 29  ;;  %271 = vmatprep.subr.bf16.mxu0 (!%p240_p10), %v300_v0  ;;  %v308_v3 = vld [vmem:[#allocation4] sm:$0xff] (!%p240_p10)   ;;  %v303_v4 = vld [vmem:[#allocation7 + $0x18] sm:$0xff] (!%p240_p10)   ;;  %v304_v5 = vld [vmem:[#allocation7 + $0x20] sm:$0xff] (!%p240_p10)  }
  0x39   :  { %272 = vmatpush3.bf16.xpose.msra.mxu0 (!%p240_p10), %v300_v0  ;;  %287 = vmatprep.mubr.bf16.mxu0 (!%p240_p10), %v308_v3  ;;  %v305_v6 = vld [vmem:[#allocation7 + $0x28] sm:$0xff] (!%p240_p10)   ;;  %v306_v7 = vld [vmem:[#allocation7 + $0x30] sm:$0xff] (!%p240_p10)   ;;  %v307_v8 = vld [vmem:[#allocation7 + $0x38] sm:$0xff] (!%p240_p10)  }
  0x3a   :  { %273 = vmatprep.subr.bf16.mxu0 (!%p240_p10), %v301_v1  ;;  %v309_v9 = vld [vmem:[#allocation4 + $0x8] sm:$0xff] (!%p240_p10)   ;;  %v260_v10 = vld [vmem:[#allocation9 + $0x8] sm:$0xff] (!%p240_p10)   ;;  %v253_v11 = vld [vmem:[#allocation9] sm:$0xff] (!%p240_p10)  }
  0x3b   :  { %v258_v12 = vunpack.c.l.b16 (!%p240_p10), %v260_v10  ;;  %v254_v13 = vunpack.c.l.b16 (!%p240_p10), %v253_v11  ;;  %v259_v14 = vunpack.c.h.b16 (!%p240_p10), %v260_v10  ;;  %v255_v15 = vunpack.c.h.b16 (!%p240_p10), %v253_v11 }
  0x3d   :  { %v204_v16 = vcvt.s32.f32 (!%p240_p10), %v258_v12  ;;  %v202_v17 = vcvt.s32.f32 (!%p240_p10), %v254_v13  ;;  %v205_v18 = vcvt.s32.f32 (!%p240_p10), %v259_v14  ;;  %v203_v20 = vcvt.s32.f32 (!%p240_p10), %v255_v15 }
  0x41   :  { %274 = vmatpush3.bf16.xpose.msra.mxu0 %v301_v1 }
  0x42   :  { %275 = vmatprep.subr.bf16.mxu0 %v302_v2 }
  0x49   :  { %276 = vmatpush3.bf16.xpose.msra.mxu0 %v302_v2 }
  0x4a   :  { %277 = vmatprep.subr.bf16.mxu0 %v303_v4 }
  0x51   :  { %278 = vmatpush3.bf16.xpose.msra.mxu0 %v303_v4 }
  0x52   :  { %279 = vmatprep.subr.bf16.mxu0 %v304_v5 }
  0x59   :  { %280 = vmatpush3.bf16.xpose.msra.mxu0 %v304_v5 }
  0x5a   :  { %281 = vmatprep.subr.bf16.mxu0 %v305_v6 }
  0x61   :  { %282 = vmatpush3.bf16.xpose.msra.mxu0 %v305_v6 }
  0x62   :  { %283 = vmatprep.subr.bf16.mxu0 %v306_v7 }
  0x69   :  { %284 = vmatpush3.bf16.xpose.msra.mxu0 %v306_v7 }
  0x6a   :  { %285 = vmatprep.subr.bf16.mxu0 %v307_v8 }
  0x71   :  { %286 = vmatpush3.bf16.xpose.msra.mxu0 %v307_v8 }
  0x78   :  { %288 = vmatmul.mubr.bf16.vlgmr.msra.gmra.mrb[0].mxu0 %v309_v9 }
 0x14b   :  { %v289_v19 = vpop.f32.mrb[0].mxu0 }
 0x14c   :  { %v208_v21 = vmul.f32 %v289_v19, %v204_v16  ;;  %v179_v22 = vpop.f32.mrb[1].mxu0 }
 0x14d   :  { %v206_v23 = vmul.f32 %v202_v17, %v179_v22  ;;  %v290_v24 = vpop.f32.mrb[2].mxu0 }
 0x14e   :  { %212 = vst [vmem:[#allocation10 + $0x10] sm:$0xff] %v208_v21  ;;  %v209_v25 = vmul.f32 %v290_v24, %v205_v18  ;;  %v182_v26 = vpop.f32.mrb[3].mxu0 }
 0x14f   :  { %210 = vst [vmem:[#allocation10] sm:$0xff] %v206_v23  ;;  %v207_v27 = vmul.f32 %v203_v20, %v182_v26 }
 0x150   :  { %213 = vst [vmem:[#allocation10 + $0x18] sm:$0xff] %v209_v25 }
 0x151   :  { %211 = vst [vmem:[#allocation10 + $0x8] sm:$0xff] %v207_v27 }
 0x152 PF:  { %p251_p11 = scmp.gt.s32.totalorder %s508_s0, 0 }
 0x153   :  { %v409_v28 = vmov (!%p251_p11), 0.0  }
 0x154   :  { %217 = sbr.rel (%p251_p11) target bundleno = 347 (0x15b), region = 33  ;;  %218 = vst [vmem:[#allocation10] sm:$0xff] (!%p251_p11), %v409_v28  ;;  %219 = vst [vmem:[#allocation10 + $0x8] sm:$0xff] (!%p251_p11), %v409_v28 }
 0x155   :  { %220 = vst [vmem:[#allocation10 + $0x10] sm:$0xff] (!%p251_p11), %v409_v28  ;;  %221 = vst [vmem:[#allocation10 + $0x18] sm:$0xff] (!%p251_p11), %v409_v28 }
 0x15b PF:  { %s410_s28 = smov [#allocation10]  }
 0x15c   :  { %s227_s29 = sshll.u32 %s410_s28, 4  ;;  %s228_s29 = int_to_ptr.vmem [resolvable:$true] %s227_s29 }
 0x15d   :  { %s376_s30 = scalar_lea.vmem %s228_s29, 512  ;;  %p381_p13 = scmp.lt.s32.totalorder %s228_s29, %s228_s29 }
 0x15e   :  { %p377_p12 = scmp.ne.s32.totalorder %s228_s29, %s376_s30  ;;  %p382_p0 = scmp.lt.s32.totalorder %s376_s30, %s376_s30 }
 0x160   :  { %p383_p1 = por %p382_p0, %p381_p13 }
 0x162   :  { %p384_p2 = pnand %p383_p1, %p377_p12 }
 0x164   :  { %387 = shalt.err (!%p384_p2)
}
 0x165   :  { %s388_s0 = scalar_lea.hbm %s512_s4, 512 }
 0x166   :  { %p389_p3 = scmp.ne.s32.totalorder %s512_s4, %s388_s0  ;;  %p392_p4 = scmp.lt.u32.totalorder %s388_s0, %s512_s4 }
 0x168   :  { %p394_p5 = pnand %p392_p4, %p389_p3 }
 0x16a   :  { %397 = shalt.err (!%p394_p5)
}
 0x16b   :  { %s411_s11 = smov 128   ;;  %s412_s12 = smov 8  }
 0x16c   :  { %233 = dma.vmem_to_hbm [thread:$0]  %s228_s29, 512, %s512_s4, [#allocation6], %s411_s11, %s411_s11, %s412_s12  }
 0x16d   :  { %402 = dma.done.wait [#allocation6], 512  }
 0x16e   :  { %403 = vsyncadd [#allocation6], 4294966784 }
 0x16f   :  { %237 = vsyncpa [#allocation5], 1 }
 0x170   :  { %238 = vsyncpa [#allocation8], 1 }
 0x171   :  { %239 = vsyncpa [#allocation6], 1 }

</bundles_post_ra>
